<compile_context>
chip_gen: v7x
topology: tpu7x:2x2x1
jax: 0.10.0
libtpu: 0.0.40
codegen_flags: <defaults>
</compile_context>

<pallas_src>
import functools

import jax
import jax.numpy as jnp
from jax.experimental import pallas as pl
from jax.experimental.pallas import tpu as pltpu


# -----------------------------------------------------------------------------
# Per-chip configuration (trace-time, best-effort query).
# -----------------------------------------------------------------------------
def _chip_config():
    """VMEM budgets + megacore hint derived from the local TPU generation.

    v5e / v6e: 128 MiB VMEM, 1 TensorCore  -> large budgets, 1 block is fine.
    v7x:        64 MiB VMEM, 2 TensorCores -> conservative budgets, >=2 blocks.
    Unknown: assume the small-VMEM (v7x-safe) configuration.
    """
    vmem = 64 * 1024 * 1024
    try:
        info = pltpu.get_tpu_info()
        v = getattr(info, "vmem_capacity_bytes", None)
        if v:
            vmem = int(v)
    except Exception:
        pass
    if vmem >= 128 * 1024 * 1024:          # v5e / v6e class
        return dict(vmem_limit=100 * 1024 * 1024,
                    fused_budget=56 * 1024 * 1024,
                    tile_target=16 * 1024 * 1024,
                    min_fused_blocks=1)
    # v7x class (64 MiB per TensorCore, 2 TCs per chip).
    return dict(vmem_limit=48 * 1024 * 1024,
                fused_budget=24 * 1024 * 1024,
                tile_target=8 * 1024 * 1024,
                min_fused_blocks=2)


# -----------------------------------------------------------------------------
# Fused single-pass kernel: one (N, c_blk, HW) slab per grid step.
# -----------------------------------------------------------------------------
def _fused_kernel(a_ref, b_ref, x_ref, gamma_ref, beta_ref, o_ref, *, eps, inv_count):
    x = x_ref[...].astype(jnp.float32)                  # (N, c_blk, HW)

    # Per-channel batch statistics (biased variance, PyTorch training BN).
    s = jnp.sum(jnp.sum(x, axis=2, keepdims=True), axis=0, keepdims=True)
    s2 = jnp.sum(jnp.sum(x * x, axis=2, keepdims=True), axis=0, keepdims=True)
    mean = s * inv_count
    # NOTE: E[x^2]-mean^2 in f32 can cancel for huge-|mean| inputs; the clamp
    # guards tiny negatives (fine for BN-style activations).
    var = jnp.maximum(s2 * inv_count - mean * mean, 0.0)
    inv_std = jax.lax.rsqrt(var + eps)

    gamma = gamma_ref[...].reshape(1, -1, 1)            # (1, c_blk, 1)
    beta = beta_ref[...].reshape(1, -1, 1)
    a = a_ref[0]
    b = b_ref[0]

    # out = a*x + b*(gamma*(x-mean)*inv_std + beta)  folded into x*scale + shift
    scale = a + b * gamma * inv_std
    shift = b * (beta - gamma * inv_std * mean)
    o_ref[...] = (x * scale + shift).astype(o_ref.dtype)


# -----------------------------------------------------------------------------
# Two-pass path, pass 1: per-(N-block) partial sum / sum-of-squares.
# Output blocks are private to each (n, c) grid point -> n and c can be
# parallel (megacore-sharded); only the hw axis accumulates (arbitrary).
# -----------------------------------------------------------------------------
def _stats_kernel(x_ref, sum_ref, sumsq_ref):
    @pl.when(pl.program_id(2) == 0)
    def _():
        sum_ref[...] = jnp.zeros_like(sum_ref)
        sumsq_ref[...] = jnp.zeros_like(sumsq_ref)

    x = x_ref[...].astype(jnp.float32)                  # (nb, c_blk, hw_tile)
    sum_ref[...] += jnp.sum(jnp.sum(x, axis=2, keepdims=True),
                            axis=0, keepdims=True)
    sumsq_ref[...] += jnp.sum(jnp.sum(x * x, axis=2, keepdims=True),
                              axis=0, keepdims=True)


# -----------------------------------------------------------------------------
# Two-pass path, pass 2: apply folded per-channel scale/shift.
# -----------------------------------------------------------------------------
def _apply_kernel(scale_ref, shift_ref, x_ref, o_ref):
    x = x_ref[...].astype(jnp.float32)                  # (nb, c_blk, hw_tile)
    scale = scale_ref[...].reshape(1, -1, 1)
    shift = shift_ref[...].reshape(1, -1, 1)
    o_ref[...] = (x * scale + shift).astype(o_ref.dtype)


# -----------------------------------------------------------------------------
# Tiling helpers.
# -----------------------------------------------------------------------------
def _fused_channel_block(N, C, HW, in_item, out_item, sub, budget, min_blocks):
    """Channel block size for the fused path, or None (-> two-pass)."""
    M = N * HW
    # 2x input + 2x output double buffers (native dtype) + ~3 f32 intermediates
    # (x-as-f32, x*x, x*scale) per element of the block.
    bytes_per_chan = (2 * in_item + 2 * out_item + 3 * 4) * M

    def fits(cb):
        return cb * bytes_per_chan <= budget

    if C % sub != 0:
        # Only a full-C block is layout-legal (block dim == full array dim).
        return C if fits(C) else None

    candidates = [cb for cb in range(sub, C + 1, sub) if C % cb == 0 and fits(cb)]
    if not candidates:
        return None
    # Prefer the largest block that still yields >= min_blocks grid steps so a
    # 2-TensorCore chip (v7x) can shard the grid; otherwise the largest block.
    pref = [cb for cb in candidates if C // cb >= min_blocks]
    return max(pref) if pref else max(candidates)


def _two_pass_tiling(N, C, HW, itemsize, sub, tile_target):
    """(nb, c_blk, hw_tile) for the tiled two-pass path.

    Lane-dense (hw_tile a multiple of 128 or the full HW extent), sized so the
    x-block stays within `tile_target` bytes (double buffers accounted for in
    the per-chip budgets)."""
    def xbytes(nb, cb, hw):
        return itemsize * nb * cb * hw

    # Lane tile: largest 128-multiple divisor of HW within the target.
    if HW % 128 == 0:
        hw_tile = 128
        t = 256
        while t <= HW:
            if HW % t == 0 and xbytes(1, C, t) <= tile_target:
                hw_tile = t
            t += 128
    else:
        hw_tile = HW                                    # full extent is always legal

    # Channel tile: only when a full-C row of hw_tile overshoots the target
    # (very large C, or large non-128-aligned HW -> VMEM guard).
    c_blk = C
    if xbytes(1, C, hw_tile) > tile_target and C % sub == 0 and C > sub:
        best = None
        cb = sub
        while cb <= C:
            if C % cb == 0 and xbytes(1, cb, hw_tile) <= tile_target:
                best = cb
            cb += sub
        c_blk = best if best is not None else sub

    # Batch grouping: merge several images per step while the block stays small
    # (helps when HW only has small 128-multiple divisors).
    nb = 1
    if c_blk == C:
        for d in range(2, N + 1):
            if N % d == 0 and xbytes(d, C, hw_tile) <= tile_target:
                nb = d
    return nb, c_blk, hw_tile


# -----------------------------------------------------------------------------
# Public wrapper.
# -----------------------------------------------------------------------------
def adaptive_batch_norm2d(x, a, b, gamma, beta, *, eps=1e-5,
                          force_two_pass=False, hw_tile=None):
    """x: (N, C, H, W).  a, b: scalars.  gamma, beta: (C,).  Training-mode BN."""
    N, C, H, W = x.shape
    HW = H * W
    count = N * HW
    cfg = _chip_config()

    in_item = jnp.dtype(x.dtype).itemsize
    out_item = in_item
    sub = max(8, 32 // in_item)          # sublane granularity: f32:8, bf16:16, i8:32

    x3d = x.reshape(N, C, HW)            # free view, no NCHW transpose
    gamma2d = jnp.asarray(gamma, jnp.float32).reshape(C, 1)
    beta2d = jnp.asarray(beta, jnp.float32).reshape(C, 1)
    a_f = jnp.asarray(a, jnp.float32).reshape(())
    b_f = jnp.asarray(b, jnp.float32).reshape(())

    c_blk = None
    if not force_two_pass:
        c_blk = _fused_channel_block(N, C, HW, in_item, out_item, sub,
                                     cfg["fused_budget"], cfg["min_fused_blocks"])

    if c_blk is not None:
        # ---- fused single-pass path (x read once, written once) -------------
        kernel = functools.partial(_fused_kernel, eps=eps, inv_count=1.0 / count)
        out3d = pl.pallas_call(
            kernel,
            out_shape=jax.ShapeDtypeStruct((N, C, HW), x.dtype),
            grid=(C // c_blk,),
            in_specs=[
                pl.BlockSpec(memory_space=pltpu.MemorySpace.SMEM),   # a
                pl.BlockSpec(memory_space=pltpu.MemorySpace.SMEM),   # b
                pl.BlockSpec((N, c_blk, HW), lambda c: (0, c, 0)),   # x
                pl.BlockSpec((c_blk, 1), lambda c: (c, 0)),          # gamma
                pl.BlockSpec((c_blk, 1), lambda c: (c, 0)),          # beta
            ],
            out_specs=pl.BlockSpec((N, c_blk, HW), lambda c: (0, c, 0)),
            compiler_params=pltpu.CompilerParams(
                dimension_semantics=("parallel",),
                vmem_limit_bytes=cfg["vmem_limit"]),
        )(a_f.reshape(1), b_f.reshape(1), x3d, gamma2d, beta2d)
        return out3d.reshape(N, C, H, W)

    # ---- two-pass tiled path -------------------------------------------------
    if hw_tile is not None:
        nb, c_blk2, hwt = 1, C, hw_tile           # explicit override (tests)
    else:
        nb, c_blk2, hwt = _two_pass_tiling(N, C, HW, in_item, sub, cfg["tile_target"])
    assert HW % hwt == 0 and N % nb == 0 and C % c_blk2 == 0
    n_blocks = N // nb
    grid = (n_blocks, C // c_blk2, HW // hwt)

    # Pass 1: per-(N-block) partial sum / sum-of-squares.
    sums_p, sumsq_p = pl.pallas_call(
        _stats_kernel,
        out_shape=(jax.ShapeDtypeStruct((n_blocks, C, 1), jnp.float32),
                   jax.ShapeDtypeStruct((n_blocks, C, 1), jnp.float32)),
        grid=grid,
        in_specs=[pl.BlockSpec((nb, c_blk2, hwt), lambda n, c, t: (n, c, t))],
        out_specs=(pl.BlockSpec((1, c_blk2, 1), lambda n, c, t: (n, c, 0)),
                   pl.BlockSpec((1, c_blk2, 1), lambda n, c, t: (n, c, 0))),
        compiler_params=pltpu.CompilerParams(
            dimension_semantics=("parallel", "parallel", "arbitrary"),
            vmem_limit_bytes=cfg["vmem_limit"]),
    )(x3d)

    # Tiny (C,)-sized math: fold BN affine + a/b blend into one scale/shift.
    # NOTE: var = E[x^2]-mean^2 can cancel for very large |mean|; the clamp
    # guards tiny negatives (fine for BN-style activations).
    sums = jnp.sum(sums_p, axis=0)                     # (C, 1)
    sumsqs = jnp.sum(sumsq_p, axis=0)                  # (C, 1)
    mean = sums / count
    var = jnp.maximum(sumsqs / count - mean * mean, 0.0)
    inv_std = jax.lax.rsqrt(var + eps)
    scale = (a_f + b_f * gamma2d * inv_std).astype(jnp.float32)        # (C, 1)
    shift = (b_f * (beta2d - gamma2d * inv_std * mean)).astype(jnp.float32)

    # Pass 2: out = x * scale[c] + shift[c] (1 mul + 1 add per element).
    out3d = pl.pallas_call(
        _apply_kernel,
        out_shape=jax.ShapeDtypeStruct((N, C, HW), x.dtype),
        grid=grid,
        in_specs=[
            pl.BlockSpec((c_blk2, 1), lambda n, c, t: (c, 0)),          # scale
            pl.BlockSpec((c_blk2, 1), lambda n, c, t: (c, 0)),          # shift
            pl.BlockSpec((nb, c_blk2, hwt), lambda n, c, t: (n, c, t)), # x
        ],
        out_specs=pl.BlockSpec((nb, c_blk2, hwt), lambda n, c, t: (n, c, t)),
        compiler_params=pltpu.CompilerParams(
            dimension_semantics=("parallel", "parallel", "parallel"),
            vmem_limit_bytes=cfg["vmem_limit"]),
    )(scale, shift, x3d)

    return out3d.reshape(N, C, H, W)


# -----------------------------------------------------------------------------
# Reference + test.
# -----------------------------------------------------------------------------
def _reference(x, a, b, gamma, beta, eps=1e-5):
    mean = jnp.mean(x, axis=(0, 2, 3), keepdims=True)
    var = jnp.mean((x - mean) ** 2, axis=(0, 2, 3), keepdims=True)
    bn = (x - mean) / jnp.sqrt(var + eps)
    bn = bn * gamma.reshape(1, -1, 1, 1) + beta.reshape(1, -1, 1, 1)
    return a * x + b * bn


if __name__ == "__main__":
    key = jax.random.PRNGKey(0)
    N, C, H, W = 2, 4, 16, 16
    x = jax.random.normal(key, (N, C, H, W), dtype=jnp.float32)

    # Deterministic parameter values (PyTorch's a/b are uninitialized memory;
    # BatchNorm2d affine init is gamma=1, beta=0).
    a = 0.75
    b = 0.25
    gamma = jnp.ones((C,), jnp.float32)
    beta = jnp.zeros((C,), jnp.float32)

    ref = _reference(x, a, b, gamma, beta)

    # 1) Fused single-pass path (chosen automatically for small inputs).
    out = adaptive_batch_norm2d(x, a, b, gamma, beta)
    out = jax.block_until_ready(out)
    assert out.shape == (N, C, H, W)
    assert jnp.max(jnp.abs(out - ref)) < 1e-4, "fused path mismatch vs reference"

    # 2) Two-pass tiled path (forced, multiple HW tiles) — exercises the
    #    partial-stats accumulation grid + apply grid.
    out2 = adaptive_batch_norm2d(x, a, b, gamma, beta,
                                 force_two_pass=True, hw_tile=128)
    out2 = jax.block_until_ready(out2)
    assert jnp.max(jnp.abs(out2 - ref)) < 1e-4, "two-pass path mismatch vs reference"

    print("KERNEL_OK")
</pallas_src>

<mosaic_0001>
module attributes {stable_mosaic.version = 11 : i64} {
  func.func @_fused_kernel(%arg0: i32, %arg1: memref<1xf32, #tpu.memory_space<smem>>, %arg2: memref<1xf32, #tpu.memory_space<smem>>, %arg3: memref<2x4x256xf32, #tpu.memory_space<vmem>>, %arg4: memref<4x1xf32, #tpu.memory_space<vmem>>, %arg5: memref<4x1xf32, #tpu.memory_space<vmem>>, %arg6: memref<2x4x256xf32, #tpu.memory_space<vmem>>) attributes {dimension_semantics = [#tpu.dimension_semantics<parallel>], iteration_bounds = array<i64: 1>, scalar_prefetch = 0 : i64, scratch_operands = 0 : i64, tpu.core_type = #tpu.core_type<tc>, window_params = [{transform_indices = @transform_0, window_bounds = array<i64: 1>}, {transform_indices = @transform_1, window_bounds = array<i64: 1>}, {transform_indices = @transform_2, window_bounds = array<i64: 2, 4, 256>}, {transform_indices = @transform_3, window_bounds = array<i64: 4, 1>}, {transform_indices = @transform_4, window_bounds = array<i64: 4, 1>}, {transform_indices = @transform_5, window_bounds = array<i64: 2, 4, 256>}]} {
    %c0 = arith.constant 0 : index
    %c0_0 = arith.constant 0 : index
    %c0_1 = arith.constant 0 : index
    %0 = vector.load %arg3[%c0, %c0_0, %c0_1] : memref<2x4x256xf32, #tpu.memory_space<vmem>>, vector<2x4x256xf32>
    %cst = arith.constant dense<0.000000e+00> : vector<2x4xf32>
    %1 = vector.multi_reduction <add>, %0, %cst [2] : vector<2x4x256xf32> to vector<2x4xf32>
    %2 = vector.shape_cast %1 : vector<2x4xf32> to vector<2x4x1xf32>
    %cst_2 = arith.constant dense<0.000000e+00> : vector<4x1xf32>
    %3 = vector.multi_reduction <add>, %2, %cst_2 [0] : vector<2x4x1xf32> to vector<4x1xf32>
    %4 = vector.shape_cast %3 : vector<4x1xf32> to vector<1x4x1xf32>
    %5 = arith.mulf %0, %0 : vector<2x4x256xf32>
    %cst_3 = arith.constant dense<0.000000e+00> : vector<2x4xf32>
    %6 = vector.multi_reduction <add>, %5, %cst_3 [2] : vector<2x4x256xf32> to vector<2x4xf32>
    %7 = vector.shape_cast %6 : vector<2x4xf32> to vector<2x4x1xf32>
    %cst_4 = arith.constant dense<0.000000e+00> : vector<4x1xf32>
    %8 = vector.multi_reduction <add>, %7, %cst_4 [0] : vector<2x4x1xf32> to vector<4x1xf32>
    %9 = vector.shape_cast %8 : vector<4x1xf32> to vector<1x4x1xf32>
    %cst_5 = arith.constant 0.001953125 : f32
    %10 = vector.broadcast %cst_5 : f32 to vector<1x4x1xf32>
    %11 = arith.mulf %4, %10 : vector<1x4x1xf32>
    %cst_6 = arith.constant 0.001953125 : f32
    %12 = vector.broadcast %cst_6 : f32 to vector<1x4x1xf32>
    %13 = arith.mulf %9, %12 : vector<1x4x1xf32>
    %14 = arith.mulf %11, %11 : vector<1x4x1xf32>
    %15 = arith.subf %13, %14 : vector<1x4x1xf32>
    %cst_7 = arith.constant 0.000000e+00 : f32
    %16 = vector.broadcast %cst_7 : f32 to vector<1x4x1xf32>
    %17 = arith.maximumf %15, %16 : vector<1x4x1xf32>
    %cst_8 = arith.constant 9.99999974E-6 : f32
    %18 = vector.broadcast %cst_8 : f32 to vector<1x4x1xf32>
    %19 = arith.addf %17, %18 : vector<1x4x1xf32>
    %20 = math.rsqrt %19 : vector<1x4x1xf32>
    %c0_9 = arith.constant 0 : index
    %c0_10 = arith.constant 0 : index
    %21 = vector.load %arg4[%c0_9, %c0_10] : memref<4x1xf32, #tpu.memory_space<vmem>>, vector<4x1xf32>
    %22 = vector.shape_cast %21 : vector<4x1xf32> to vector<1x4x1xf32>
    %c0_11 = arith.constant 0 : index
    %c0_12 = arith.constant 0 : index
    %23 = vector.load %arg5[%c0_11, %c0_12] : memref<4x1xf32, #tpu.memory_space<vmem>>, vector<4x1xf32>
    %24 = vector.shape_cast %23 : vector<4x1xf32> to vector<1x4x1xf32>
    %c0_13 = arith.constant 0 : index
    %25 = memref.load %arg1[%c0_13] : memref<1xf32, #tpu.memory_space<smem>>
    %c0_14 = arith.constant 0 : index
    %26 = memref.load %arg2[%c0_14] : memref<1xf32, #tpu.memory_space<smem>>
    %27 = vector.broadcast %26 : f32 to vector<1x4x1xf32>
    %28 = arith.mulf %27, %22 : vector<1x4x1xf32>
    %29 = arith.mulf %28, %20 : vector<1x4x1xf32>
    %30 = vector.broadcast %25 : f32 to vector<1x4x1xf32>
    %31 = arith.addf %30, %29 : vector<1x4x1xf32>
    %32 = arith.mulf %22, %20 : vector<1x4x1xf32>
    %33 = arith.mulf %32, %11 : vector<1x4x1xf32>
    %34 = arith.subf %24, %33 : vector<1x4x1xf32>
    %35 = vector.broadcast %26 : f32 to vector<1x4x1xf32>
    %36 = arith.mulf %35, %34 : vector<1x4x1xf32>
    %37 = vector.broadcast %31 : vector<1x4x1xf32> to vector<2x4x256xf32>
    %38 = arith.mulf %0, %37 : vector<2x4x256xf32>
    %39 = vector.broadcast %36 : vector<1x4x1xf32> to vector<2x4x256xf32>
    %40 = arith.addf %38, %39 : vector<2x4x256xf32>
    %c0_15 = arith.constant 0 : index
    %c0_16 = arith.constant 0 : index
    %c0_17 = arith.constant 0 : index
    %41 = vector.load %arg6[%c0_15, %c0_16, %c0_17] : memref<2x4x256xf32, #tpu.memory_space<vmem>>, vector<2x4x256xf32>
    tpu.vector_store %arg6[%c0_15, %c0_16, %c0_17], %40 {strides = array<i32>} : memref<2x4x256xf32, #tpu.memory_space<vmem>>, vector<2x4x256xf32>,
    return
  }
  func.func @transform_0(%arg0: i32) -> i32 {
    %c0_i32 = arith.constant 0 : i32
    %c0_i32_0 = arith.constant 0 : i32
    return %c0_i32 : i32
  }
  func.func @transform_1(%arg0: i32) -> i32 {
    %c0_i32 = arith.constant 0 : i32
    %c0_i32_0 = arith.constant 0 : i32
    return %c0_i32 : i32
  }
  func.func @transform_2(%arg0: i32) -> (i32, i32, i32) {
    %c0_i32 = arith.constant 0 : i32
    %c0_i32_0 = arith.constant 0 : i32
    %c0_i32_1 = arith.constant 0 : i32
    return %c0_i32, %arg0, %c0_i32_0 : i32, i32, i32
  }
  func.func @transform_3(%arg0: i32) -> (i32, i32) {
    %c0_i32 = arith.constant 0 : i32
    %c0_i32_0 = arith.constant 0 : i32
    return %arg0, %c0_i32 : i32, i32
  }
  func.func @transform_4(%arg0: i32) -> (i32, i32) {
    %c0_i32 = arith.constant 0 : i32
    %c0_i32_0 = arith.constant 0 : i32
    return %arg0, %c0_i32 : i32, i32
  }
  func.func @transform_5(%arg0: i32) -> (i32, i32, i32) {
    %c0_i32 = arith.constant 0 : i32
    %c0_i32_0 = arith.constant 0 : i32
    %c0_i32_1 = arith.constant 0 : i32
    return %c0_i32, %arg0, %c0_i32_0 : i32, i32, i32
  }
}

</mosaic_0001>

<bundles_post_ra>
// kernel: tpu_custom_call.1
= control target key start
LH: loop header
LB: loop body
LE: loop exit
PB: predicated region body
PF: predicated region fallthrough
CT: control target
= control target key end

     0   :  { %vm31_vm0 = vcmask 1043456   ;;  %s260_s0 = inlined_call_operand.<no memory space> [shape: f32[1], index: 0, kind: input, shape index: {}]   ;;  %s261_s1 = inlined_call_operand.<no memory space> [shape: f32[1], index: 1, kind: input, shape index: {}]   ;;  %s262_s2 = inlined_call_operand.vmem [shape: f32[2,4,256], index: 2, kind: input, shape index: {}]   ;;  %s263_s3 = inlined_call_operand.vmem [shape: f32[4,1], index: 3, kind: input, shape index: {}]   ;;  %s264_s4 = inlined_call_operand.vmem [shape: f32[4,1], index: 4, kind: input, shape index: {}]   ;;  %s265_s5 = inlined_call_operand.hbm [shape: f32[2,4,256], index: 5, kind: output, shape index: {}]  }
   0x1   :  { %v205_v0 = vld [vmem:[%s262_s2] sm:$0xff]  ;;  %v210_v1 = vld [vmem:[%s262_s2 + $0x8] sm:$0xff] }
   0x2   :  { %12 = vsyncpa [#allocation5], 0  ;;  %v27_v2 = vcombine.high %v205_v0, %v205_v0  ;;  %v32_v3 = vsel %vm31_vm0, %v205_v0, 0.0  ;;  %v45_v4 = vmul.f32 %v205_v0, %v205_v0  ;;  %v28_v5 = vcombine.high %v210_v1, %v210_v1  ;;  %v73_v37 = vld [vmem:[%s263_s3] sm:$0xf] }
   0x3   :  { %v37_v6 = vsel %vm31_vm0, %v210_v1, 0.0  ;;  %v46_v7 = vmul.f32 %v210_v1, %v210_v1  ;;  %v167_v20 = vmov 0   ;;  %v77_v38 = vstv %s261_s1  ;;  %v74_v44 = vld [vmem:[%s264_s4] sm:$0xf] }
   0x4   :  { %v33_v8 = vsel %vm31_vm0, %v27_v2, 0.0  ;;  %v49_v9 = vcombine.high %v45_v4, %v45_v4  ;;  %v53_v10 = vsel %vm31_vm0, %v45_v4, 0.0  ;;  %v38_v11 = vsel %vm31_vm0, %v28_v5, 0.0  ;;  %137 = vset.pattern.permute.xlu0 %v167_v20  ;;  %138 = vset.pattern.permute.xlu1 %v167_v20 }
   0x5   :  { %v34_v12 = vadd.f32 %v33_v8, %v32_v3  ;;  %v50_v13 = vcombine.high %v46_v7, %v46_v7  ;;  %v58_v15 = vsel %vm31_vm0, %v46_v7, 0.0  ;;  %v39_v17 = vadd.f32 %v38_v11, %v37_v6 }
   0x6   :  { %v54_v14 = vsel %vm31_vm0, %v49_v9, 0.0  ;;  %v78_v39 = vmul.f32 %v77_v38, %v73_v37  ;;  %v80_v41 = vstv %s260_s0  ;;  %v168_v49 = vmov 839922192   ;;  %s169_s0 = smov [#allocation4]  }
   0x7   :  { %35 = vadd.xlane.f32.xlu0 %v34_v12  ;;  %v55_v16 = vadd.f32 %v54_v14, %v53_v10  ;;  %v59_v18 = vsel %vm31_vm0, %v50_v13, 0.0  ;;  %v91_v50 = vunpack.c.l.s4 %v168_v49  ;;  %v93_v51 = vlaneseq  ;;  %s121_s1 = sshll.u32 %s169_s0, 4  ;;  %s122_s1 = int_to_ptr.vmem [resolvable:$true] %s121_s1 }
   0x8   :  { %v60_v19 = vadd.f32 %v59_v18, %v58_v15  ;;  %s143_s3 = scalar_lea.vmem %s122_s1, 256  ;;  %p148_p1 = scmp.lt.s32.totalorder %s122_s1, %s122_s1 }
   0x9   :  { %56 = vadd.xlane.f32.xlu1 %v55_v16  ;;  %v92_v52 = vunpack.c.0.s8 %v91_v50  ;;  %v94_v53 = vshrl.u32 %v93_v51, 7  ;;  %p144_p0 = scmp.ne.s32.totalorder %s122_s1, %s143_s3  ;;  %p149_p2 = scmp.lt.s32.totalorder %s143_s3, %s143_s3 }
   0xb   :  { %40 = vadd.xlane.f32.xlu0 %v39_v17  ;;  %v95_v54 = vsub.s32 %v92_v52, %v94_v53  ;;  %p150_p3 = por %p149_p2, %p148_p1 }
   0xd   :  { %61 = vadd.xlane.f32.xlu1 %v60_v19  ;;  %p151_p4 = pnand %p150_p3, %p144_p0 }
  0x94   :  { %v36_v21 = vpop.xlane.xlu0 %35 }
  0x95   :  { %v42_v24 = vsel %vm31_vm0, %v36_v21, 0.0 }
  0x96   :  { %v57_v22 = vpop.xlane.xlu1 %56 }
  0x97   :  { %v63_v28 = vsel %vm31_vm0, %v57_v22, 0.0 }
  0x98   :  { %v41_v23 = vpop.xlane.xlu0 %40 }
  0x99   :  { %v43_v25 = vsel %vm31_vm0, %v41_v23, 0.0 }
  0x9a   :  { %v44_v26 = vadd.f32 %v43_v25, %v42_v24  ;;  %v62_v27 = vpop.xlane.xlu1 %61 }
  0x9b   :  { %v64_v29 = vsel %vm31_vm0, %v62_v27, 0.0 }
  0x9c   :  { %v66_v30 = vmul.f32 0.001953125, %v44_v26  ;;  %v65_v31 = vadd.f32 %v64_v29, %v63_v28 }
  0x9e   :  { %v68_v32 = vmul.f32 %v66_v30, %v66_v30  ;;  %v67_v33 = vmul.f32 0.001953125, %v65_v31 }
  0xa0   :  { %v69_v34 = vsub.f32 %v67_v33, %v68_v32 }
  0xa2   :  { %v70_v35 = vmax.f32 %v69_v34, 0.0 }
  0xa4   :  { %v71_v36 = vadd.f32 1e-05, %v70_v35 }
  0xa6   :  { %141 = vrsqrt.f32 %v71_v36 }
  0xb0   :  { %v142_v40 = vpop.eup %141 }
  0xb1   :  { %v79_v42 = vmul.f32 %v142_v40, %v78_v39  ;;  %v82_v43 = vmul.f32 %v142_v40, %v73_v37 }
  0xb3   :  { %v81_v45 = vadd.f32 %v80_v41, %v79_v42  ;;  %v83_v46 = vmul.f32 %v82_v43, %v66_v30 }
  0xb5   :  { %88 = vperm.xlu0 %137, %v81_v45   ;;  %v84_v47 = vsub.f32 %v74_v44, %v83_v46 }
  0xb7   :  { %v85_v48 = vmul.f32 %v84_v47, %v77_v38 }
  0xb9   :  { %102 = vperm.xlu1 %138, %v85_v48  }
 0x134   :  { %v89_v55 = vpop.permute.xlu0 %88 }
 0x135   :  { %v96_v56 = vrot.slane %v89_v55, %v95_v54 }
 0x137   :  { %v98_v58 = vmul.f32 %v96_v56, %v205_v0  ;;  %v99_v59 = vmul.f32 %v96_v56, %v210_v1 }
 0x138   :  { %v103_v57 = vpop.permute.xlu1 %102 }
 0x139   :  { %v110_v60 = vrot.slane %v103_v57, %v95_v54 }
 0x13b   :  { %v112_v61 = vadd.f32 %v110_v60, %v98_v58  ;;  %v113_v62 = vadd.f32 %v110_v60, %v99_v59 }
 0x13d   :  { %114 = vst [vmem:[#allocation4] sm:$0xff] %v112_v61  ;;  %115 = vst [vmem:[#allocation4 + $0x8] sm:$0xff] %v113_v62 }
 0x13e   :  { %154 = shalt.err (!%p151_p4)
}
 0x13f   :  { %s155_s30 = scalar_lea.hbm %s265_s5, 256 }
 0x140   :  { %p156_p5 = scmp.ne.s32.totalorder %s265_s5, %s155_s30  ;;  %p159_p6 = scmp.lt.u32.totalorder %s155_s30, %s265_s5 }
 0x142   :  { %p161_p7 = pnand %p159_p6, %p156_p5 }
 0x144   :  { %164 = shalt.err (!%p161_p7)
}
 0x145   :  { %s170_s10 = smov 128   ;;  %s171_s11 = smov 8  }
 0x146   :  { %127 = dma.vmem_to_hbm [thread:$0]  %s122_s1, 256, %s265_s5, [#allocation5], %s170_s10, %s170_s10, %s171_s11  }
 0x147   :  { %165 = dma.done.wait [#allocation5], 256  }
 0x148   :  { %166 = vsyncadd [#allocation5], 4294967040 }
 0x149   :  { %131 = vsyncpa [#allocation5], 1 }

</bundles_post_ra>
